<compile_context>
chip_gen: v5e
topology: v5e:2x2
jax: 0.10.0
libtpu: 0.0.40
codegen_flags: <defaults>
</compile_context>

<pallas_src>
import jax
import jax.numpy as jnp
from jax.experimental import pallas as pl
from jax.experimental.pallas import tpu as pltpu

NODES = 32
IN_FEATURES = 4
OUT_FEATURES = 2


def policy_kernel(xT_ref, w1t_ref, b1_ref, wd_ref, bd_ref, o_ref):
    # xT:  (4, TB)   states, batch on the lane axis (dense vregs downstream)
    # w1t: (32, 4)   layer-1 weight transposed (hT = w1t @ xT)
    # b1:  (32, 1)   layer-1 bias, column layout (lane broadcast)
    # wd:  (1, 32)   w2[:,0] - w2[:,1]
    # bd:  (1, 1)    b2[0]   - b2[1]
    # o:   (2, TB)   [P(a=0); P(a=1)] per batch element, batch on lanes (dense stores)

    # Layer 1 (Linear(4,32)) on the MXU; bias-add + ReLU on the VPU.
    hT = jnp.dot(w1t_ref[...], xT_ref[...], preferred_element_type=jnp.float32)
    hT = jnp.maximum(hT + b1_ref[...], 0.0)                                   # (32, TB)

    # Layer 2 + softmax collapsed to the logit difference, with the (32 -> 1)
    # contraction also on the MXU (no XLU sublane reduce).
    d = jnp.dot(wd_ref[...], hT, preferred_element_type=jnp.float32) + bd_ref[...]  # (1, TB)

    # softmax([l0, l1]) == [sigmoid(d), sigmoid(-d)]. Two independent sigmoids:
    # full relative precision for the small probability, never NaN (exp -> inf
    # just drives that probability to exactly 0). exp lives in the EUP slot.
    p0 = 1.0 / (1.0 + jnp.exp(-d))
    p1 = 1.0 / (1.0 + jnp.exp(d))
    o_ref[0:1, :] = p0.astype(o_ref.dtype)
    o_ref[1:2, :] = p1.astype(o_ref.dtype)


def policy_forward_featmajor(xT, w1, b1, w2, b2, *, block_batch=8192):
    """softmax(relu(x @ w1 + b1) @ w2 + b2) with x supplied feature-major.

    xT: (4, B). Returns probabilities transposed: (2, B).
    block_batch: lane tile over the batch. Sweep 8K-32K on real workloads; VMEM
    use is ~200*tb bytes, far under the v7x 64 MiB cap for that whole range.
    """
    assert block_batch % 128 == 0, "batch tile must be lane-dense (multiple of 128)"
    B = xT.shape[1]
    xT = xT.astype(jnp.float32)

    # Tiny parameter re-layouts (a few hundred bytes, done once).
    w1t = w1.T.astype(jnp.float32)                                      # (32, 4)
    b1c = b1.reshape(NODES, 1).astype(jnp.float32)                      # (32, 1)
    wd = (w2[:, 0] - w2[:, 1]).reshape(1, NODES).astype(jnp.float32)    # (1, 32)
    b2f = b2.reshape(-1).astype(jnp.float32)
    bd = (b2f[0] - b2f[1]).reshape(1, 1)                                # (1, 1)

    if B <= block_batch:
        tb = B            # single full-extent block: no (8,128) constraint, no padding
    else:
        tb = block_batch  # ragged edge block handled by Pallas (OOB writes dropped)
    grid = (pl.cdiv(B, tb),)

    out = pl.pallas_call(
        policy_kernel,
        out_shape=jax.ShapeDtypeStruct((OUT_FEATURES, B), jnp.float32),
        grid=grid,
        in_specs=[
            pl.BlockSpec((IN_FEATURES, tb), lambda i: (0, i)),
            # Constant index maps: parameters stay VMEM-resident across batch tiles.
            pl.BlockSpec((NODES, IN_FEATURES), lambda i: (0, 0)),
            pl.BlockSpec((NODES, 1), lambda i: (0, 0)),
            pl.BlockSpec((1, NODES), lambda i: (0, 0)),
            pl.BlockSpec((1, 1), lambda i: (0, 0)),
        ],
        out_specs=pl.BlockSpec((OUT_FEATURES, tb), lambda i: (0, i)),
        compiler_params=pltpu.CompilerParams(
            # Batch tiles are independent -> shard across the two v7x TensorCores.
            dimension_semantics=("parallel",),
            # Covers the full 8K-32K tile sweep (~1.6-6.5 MiB) with big margin,
            # and stays under v7x's 64 MiB physical VMEM.
            vmem_limit_bytes=32 * 1024 * 1024,
        ),
    )(xT, w1t, b1c, wd, bd)
    return out


def policy_forward(x, w1, b1, w2, b2, *, block_batch=8192):
    """PyTorch-equivalent interface: x is (B, 4), returns (B, 2) probabilities."""
    # Single XLA relayout to the feature-major layout the kernel wants. Callers
    # that already hold (4, B) states should call policy_forward_featmajor and
    # skip this HBM round trip entirely.
    xT = x.astype(jnp.float32).T
    pT = policy_forward_featmajor(xT, w1, b1, w2, b2, block_batch=block_batch)
    return pT.T


def init_params(key):
    # Deterministic init mirroring torch.nn.Linear: U(-1/sqrt(fan_in), 1/sqrt(fan_in)).
    k1, k2, k3, k4 = jax.random.split(key, 4)
    bound1 = 1.0 / jnp.sqrt(IN_FEATURES)
    bound2 = 1.0 / jnp.sqrt(NODES)
    w1 = jax.random.uniform(k1, (IN_FEATURES, NODES), jnp.float32, -bound1, bound1)
    b1 = jax.random.uniform(k2, (1, NODES), jnp.float32, -bound1, bound1)
    w2 = jax.random.uniform(k3, (NODES, OUT_FEATURES), jnp.float32, -bound2, bound2)
    b2 = jax.random.uniform(k4, (1, OUT_FEATURES), jnp.float32, -bound2, bound2)
    return w1, b1, w2, b2


def reference_forward(x, w1, b1, w2, b2):
    h = jnp.maximum(x @ w1 + b1, 0.0)
    logits = h @ w2 + b2
    return jax.nn.softmax(logits, axis=-1)


if __name__ == "__main__":
    key = jax.random.PRNGKey(0)
    k_params, k_x1, k_x2 = jax.random.split(key, 3)

    w1, b1, w2, b2 = init_params(k_params)

    # Small CartPole-style batch [batch=8, state_dim=4] — single full-extent tile.
    x_small = jax.random.normal(k_x1, (8, IN_FEATURES), jnp.float32)
    out_small = jax.block_until_ready(policy_forward(x_small, w1, b1, w2, b2))
    ref_small = reference_forward(x_small, w1, b1, w2, b2)
    assert out_small.shape == (8, OUT_FEATURES)
    assert jnp.allclose(out_small, ref_small, atol=1e-4, rtol=1e-4)
    assert jnp.allclose(jnp.sum(out_small, axis=-1), 1.0, atol=1e-4)

    # Larger ragged batch exercising the multi-tile "parallel" grid with a partial
    # edge block (no jnp.pad; Pallas drops the out-of-range writes).
    x_big = jax.random.normal(k_x2, (300, IN_FEATURES), jnp.float32)
    out_big = jax.block_until_ready(
        policy_forward(x_big, w1, b1, w2, b2, block_batch=128))
    ref_big = reference_forward(x_big, w1, b1, w2, b2)
    assert out_big.shape == (300, OUT_FEATURES)
    assert jnp.allclose(out_big, ref_big, atol=1e-4, rtol=1e-4)
    assert jnp.allclose(jnp.sum(out_big, axis=-1), 1.0, atol=1e-4)

    print("KERNEL_OK")
</pallas_src>

<mosaic_0001>
module attributes {stable_mosaic.version = 11 : i64} {
  func.func @policy_kernel(%arg0: i32, %arg1: memref<4x8xf32, #tpu.memory_space<vmem>>, %arg2: memref<32x4xf32, #tpu.memory_space<vmem>>, %arg3: memref<32x1xf32, #tpu.memory_space<vmem>>, %arg4: memref<1x32xf32, #tpu.memory_space<vmem>>, %arg5: memref<1x1xf32, #tpu.memory_space<vmem>>, %arg6: memref<2x8xf32, #tpu.memory_space<vmem>>) attributes {dimension_semantics = [#tpu.dimension_semantics<parallel>], iteration_bounds = array<i64: 1>, scalar_prefetch = 0 : i64, scratch_operands = 0 : i64, tpu.core_type = #tpu.core_type<tc>, window_params = [{transform_indices = @transform_0, window_bounds = array<i64: 4, 8>}, {pipeline_mode = #tpu.pipeline_mode<synchronous>, transform_indices = @transform_1, window_bounds = array<i64: 32, 4>}, {pipeline_mode = #tpu.pipeline_mode<synchronous>, transform_indices = @transform_2, window_bounds = array<i64: 32, 1>}, {pipeline_mode = #tpu.pipeline_mode<synchronous>, transform_indices = @transform_3, window_bounds = array<i64: 1, 32>}, {pipeline_mode = #tpu.pipeline_mode<synchronous>, transform_indices = @transform_4, window_bounds = array<i64: 1, 1>}, {transform_indices = @transform_5, window_bounds = array<i64: 2, 8>}]} {
    %c0 = arith.constant 0 : index
    %c0_0 = arith.constant 0 : index
    %0 = vector.load %arg2[%c0, %c0_0] : memref<32x4xf32, #tpu.memory_space<vmem>>, vector<32x4xf32>
    %c0_1 = arith.constant 0 : index
    %c0_2 = arith.constant 0 : index
    %1 = vector.load %arg1[%c0_1, %c0_2] : memref<4x8xf32, #tpu.memory_space<vmem>>, vector<4x8xf32>
    %cst = arith.constant dense<0.000000e+00> : vector<32x8xf32>
    %2 = tpu.matmul %0, %1, %cst {dimension_numbers = #tpu.dot_dimension_numbers<[1], [0], [0], [1], [0, 0, 1, 1], [], []>} : vector<32x4xf32>, vector<4x8xf32>, vector<32x8xf32> -> vector<32x8xf32>
    %c0_3 = arith.constant 0 : index
    %c0_4 = arith.constant 0 : index
    %3 = vector.load %arg3[%c0_3, %c0_4] : memref<32x1xf32, #tpu.memory_space<vmem>>, vector<32x1xf32>
    %4 = vector.broadcast %3 : vector<32x1xf32> to vector<32x8xf32>
    %5 = arith.addf %2, %4 : vector<32x8xf32>
    %cst_5 = arith.constant 0.000000e+00 : f32
    %6 = vector.broadcast %cst_5 : f32 to vector<32x8xf32>
    %7 = arith.maximumf %5, %6 : vector<32x8xf32>
    %c0_6 = arith.constant 0 : index
    %c0_7 = arith.constant 0 : index
    %8 = vector.load %arg4[%c0_6, %c0_7] : memref<1x32xf32, #tpu.memory_space<vmem>>, vector<1x32xf32>
    %cst_8 = arith.constant dense<0.000000e+00> : vector<1x8xf32>
    %9 = tpu.matmul %8, %7, %cst_8 {dimension_numbers = #tpu.dot_dimension_numbers<[1], [0], [0], [1], [0, 0, 1, 1], [], []>} : vector<1x32xf32>, vector<32x8xf32>, vector<1x8xf32> -> vector<1x8xf32>
    %c0_9 = arith.constant 0 : index
    %c0_10 = arith.constant 0 : index
    %10 = vector.load %arg5[%c0_9, %c0_10] : memref<1x1xf32, #tpu.memory_space<vmem>>, vector<1x1xf32>
    %11 = vector.broadcast %10 : vector<1x1xf32> to vector<1x8xf32>
    %12 = arith.addf %9, %11 : vector<1x8xf32>
    %cst_11 = arith.constant 0.000000e+00 : f32
    %13 = vector.broadcast %cst_11 : f32 to vector<1x8xf32>
    %14 = arith.subf %13, %12 : vector<1x8xf32>
    %15 = math.exp %14 : vector<1x8xf32>
    %cst_12 = arith.constant 1.000000e+00 : f32
    %16 = vector.broadcast %cst_12 : f32 to vector<1x8xf32>
    %17 = arith.addf %16, %15 : vector<1x8xf32>
    %cst_13 = arith.constant 1.000000e+00 : f32
    %18 = vector.broadcast %cst_13 : f32 to vector<1x8xf32>
    %19 = arith.divf %18, %17 : vector<1x8xf32>
    %20 = math.exp %12 : vector<1x8xf32>
    %cst_14 = arith.constant 1.000000e+00 : f32
    %21 = vector.broadcast %cst_14 : f32 to vector<1x8xf32>
    %22 = arith.addf %21, %20 : vector<1x8xf32>
    %cst_15 = arith.constant 1.000000e+00 : f32
    %23 = vector.broadcast %cst_15 : f32 to vector<1x8xf32>
    %24 = arith.divf %23, %22 : vector<1x8xf32>
    %c0_16 = arith.constant 0 : index
    %c0_17 = arith.constant 0 : index
    %25 = vector.load %arg6[%c0_16, %c0_17] : memref<2x8xf32, #tpu.memory_space<vmem>>, vector<1x8xf32>
    tpu.vector_store %arg6[%c0_16, %c0_17], %19 {strides = array<i32>} : memref<2x8xf32, #tpu.memory_space<vmem>>, vector<1x8xf32>,
    %c1 = arith.constant 1 : index
    %c0_18 = arith.constant 0 : index
    %26 = vector.load %arg6[%c1, %c0_18] : memref<2x8xf32, #tpu.memory_space<vmem>>, vector<1x8xf32>
    tpu.vector_store %arg6[%c1, %c0_18], %24 {strides = array<i32>} : memref<2x8xf32, #tpu.memory_space<vmem>>, vector<1x8xf32>,
    return
  }
  func.func @transform_0(%arg0: i32) -> (i32, i32) {
    %c0_i32 = arith.constant 0 : i32
    %c0_i32_0 = arith.constant 0 : i32
    return %c0_i32, %arg0 : i32, i32
  }
  func.func @transform_1(%arg0: i32) -> (i32, i32) {
    %c0_i32 = arith.constant 0 : i32
    %c0_i32_0 = arith.constant 0 : i32
    %c0_i32_1 = arith.constant 0 : i32
    return %c0_i32, %c0_i32_0 : i32, i32
  }
  func.func @transform_2(%arg0: i32) -> (i32, i32) {
    %c0_i32 = arith.constant 0 : i32
    %c0_i32_0 = arith.constant 0 : i32
    %c0_i32_1 = arith.constant 0 : i32
    return %c0_i32, %c0_i32_0 : i32, i32
  }
  func.func @transform_3(%arg0: i32) -> (i32, i32) {
    %c0_i32 = arith.constant 0 : i32
    %c0_i32_0 = arith.constant 0 : i32
    %c0_i32_1 = arith.constant 0 : i32
    return %c0_i32, %c0_i32_0 : i32, i32
  }
  func.func @transform_4(%arg0: i32) -> (i32, i32) {
    %c0_i32 = arith.constant 0 : i32
    %c0_i32_0 = arith.constant 0 : i32
    %c0_i32_1 = arith.constant 0 : i32
    return %c0_i32, %c0_i32_0 : i32, i32
  }
  func.func @transform_5(%arg0: i32) -> (i32, i32) {
    %c0_i32 = arith.constant 0 : i32
    %c0_i32_0 = arith.constant 0 : i32
    return %c0_i32, %arg0 : i32, i32
  }
}

</mosaic_0001>

<bundles_post_ra>
// kernel: tpu_custom_call.1
= control target key start
LH: loop header
LB: loop body
LE: loop exit
PB: predicated region body
PF: predicated region fallthrough
CT: control target
= control target key end

     0   :  { %s311_s0 = inlined_call_operand.vmem [shape: f32[4,8], index: 0, kind: input, shape index: {}]   ;;  %s312_s1 = inlined_call_operand.vmem [shape: f32[32,4], index: 1, kind: input, shape index: {}]   ;;  %s313_s2 = inlined_call_operand.vmem [shape: f32[32,1], index: 2, kind: input, shape index: {}]   ;;  %s314_s3 = inlined_call_operand.vmem [shape: f32[1,32], index: 3, kind: input, shape index: {}]   ;;  %s315_s4 = inlined_call_operand.<no memory space> [shape: f32[1,1], index: 4, kind: input, shape index: {}]   ;;  %s316_s5 = inlined_call_operand.hbm [shape: f32[2,8], index: 5, kind: output, shape index: {}]  }
   0x1   :  { %v10_v0 = vstv %s315_s4 }
   0x2   :  { %11 = vst [vmem:[#allocation2] sm:$0x1] %v10_v0 }
   0x3   :  { %v27_v1 = vld [vmem:[%s311_s0] sm:$0xf]  ;;  %vm65_vm0 = vcmask 1043456   ;;  %v24_v2 = vld [vmem:[%s312_s1 + $0x8] sm:$0xff]  ;;  %vm52_vm1 = vcmask 31744   ;;  %v26_v3 = vld [vmem:[%s312_s1 + $0x18] sm:$0xff] }
   0x4   :  { %196 = vmatpush.msk.msra.mxu2 %vm65_vm0, %v27_v1  ;;  %197 = vmatpush.msk.msra.mxu3 %vm65_vm0, %v27_v1  ;;  %v31_v4 = vld [vmem:[%s313_s2 + $0x18] sm:$0xff]  ;;  %v23_v5 = vld [vmem:[%s312_s1] sm:$0xff]  ;;  %v237_v6 = vmov 0   ;;  %v29_v7 = vld [vmem:[%s313_s2 + $0x8] sm:$0xff] }
   0x5   :  { %192 = vmatmul.msk.f32.vlgmr.msra.gmra.mxu2 %vm52_vm1, %v24_v2  ;;  %194 = vmatmul.msk.f32.vlgmr.msra.gmra.mxu3 %vm52_vm1, %v26_v3 }
   0x6   :  { %200 = vset.pattern.permute.xlu0 %v237_v6  ;;  %190 = vmatpush.msk.msra.mxu0 %vm65_vm0, %v27_v1 }
   0x7   :  { %12 = vsyncpa [#allocation4], 0  ;;  %49 = vperm.xlu0 %200, %v31_v4   ;;  %191 = vmatmul.msk.f32.vlgmr.msra.gmra.mxu0 %vm52_vm1, %v23_v5  ;;  %v25_v8 = vld [vmem:[%s312_s1 + $0x10] sm:$0xff]  ;;  %v28_v10 = vld [vmem:[%s313_s2] sm:$0xff]  ;;  %vm110_vm2 = vcmask 261120   ;;  %vm171_vm7 = vcmask 57344  }
   0x8   :  { %201 = vset.pattern.permute.xlu1 %v237_v6  ;;  %202 = vset.pattern.permute.xlu2 %v237_v6  ;;  %v30_v9 = vld [vmem:[%s313_s2 + $0x10] sm:$0xff]  ;;  %v102_v28 = vld [vmem:[%s314_s3] sm:$0x1]  ;;  %s238_s3 = smov [#allocation3]   ;;  %s181_s14 = sshll.u32 %s316_s5, 4  ;;  %s182_s14 = int_to_ptr.hbm [resolvable:$true] %s181_s14 }
   0x9   :  { %39 = vperm.xlu1 %201, %v29_v7   ;;  %v103_v11 = vld [vmem:[#allocation2] sm:$0x1]  ;;  %s179_s11 = sshll.u32 %s238_s3, 4  ;;  %s180_s11 = int_to_ptr.vmem [resolvable:$true] %s179_s11 }
   0xa   :  { %106 = vperm.xlu2 %202, %v103_v11  }
   0xd   :  { %193 = vmatmul.msk.f32.gmra.mxu2 %vm52_vm1, %v25_v8 }
   0xf   :  { %44 = vperm.xlu0 %200, %v30_v9  }
  0x11   :  { %34 = vperm.xlu1 %201, %v28_v10  }
  0x64   :  { %v107_v29 = vpop.permute.xlu2 %106 }
  0x65   :  { %v109_v30 = vperm.slane %v107_v29, 0 }
  0x79   :  { %v50_v12 = vpop.permute.xlu0 %49 }
  0x7b   :  { %v40_v13 = vpop.permute.xlu1 %39 }
  0x81   :  { %v45_v18 = vpop.permute.xlu0 %44 }
  0x83   :  { %v35_v19 = vpop.permute.xlu1 %34 }
  0x84   :  { %v86_v20 = vpop.f32.mrf.mxu0 }
  0x85   :  { %v87_v24 = vadd.f32 %v86_v20, %v35_v19 }
  0x87   :  { %v98_v27 = vmax.f32 %v87_v24, 0.0 }
  0x88   :  { %v89_v14 = vpop.f32.mrf.mxu2  ;;  %v95_v15 = vpop.f32.mrf.mxu3 }
  0x89   :  { %v96_v16 = vadd.f32 %v95_v15, %v50_v12  ;;  %v90_v22 = vadd.f32 %v89_v14, %v40_v13 }
  0x8b   :  { %v101_v17 = vmax.f32 %v96_v16, 0.0  ;;  %v99_v26 = vmax.f32 %v90_v22, 0.0 }
  0x8d   :  { %126 = vmatpush.msra.mxu1 %v101_v17 }
  0x90   :  { %v92_v21 = vpop.f32.mrf.mxu2 }
  0x91   :  { %v93_v23 = vadd.f32 %v92_v21, %v45_v18 }
  0x93   :  { %v100_v25 = vmax.f32 %v93_v23, 0.0 }
  0x95   :  { %127 = vmatpush.msra.mxu1 %v100_v25 }
  0x97   :  { %128 = vmatpush.msra.mxu1 %v99_v26 }
  0x99   :  { %129 = vmatpush.msra.mxu1 %v98_v27 }
  0x9a   :  { %195 = vmatmul.msk.f32.vlgmr.msra.gmra.mxu1 %vm110_vm2, %v102_v28 }
 0x117   :  { %v131_v31 = vpop.f32.mrf.mxu1 }
 0x118   :  { %v132_v32 = vadd.f32 %v131_v31, %v109_v30 }
 0x11a   :  { %v134_v33 = vsub.f32 0.0, %v132_v32  ;;  %v153_v34 = vmul.f32 1.442695, %v132_v32 }
 0x11c   :  { %v135_v35 = vmul.f32 1.442695, %v134_v33  ;;  %203 = vpow2.f32 %v153_v34 }
 0x11e   :  { %205 = vpow2.f32 %v135_v35 }
 0x122   :  { %v204_v36 = vpop.eup %203 }
 0x123   :  { %v155_v37 = vadd.f32 1.0, %v204_v36 }
 0x124   :  { %v206_v38 = vpop.eup %205 }
 0x125   :  { %v137_v39 = vadd.f32 1.0, %v206_v38  ;;  %207 = vrcp.f32 %v155_v37  ;;  %v167_v45 = vand.u32 2147483648, %v155_v37  ;;  %v165_v48 = vand.u32 2147483647, %v155_v37 }
 0x126   :  { %vm161_vm4 = vweird.f32 %v155_v37 }
 0x127   :  { %209 = vrcp.f32 %v137_v39  ;;  %v149_v49 = vand.u32 2147483648, %v137_v39  ;;  %v147_v51 = vand.u32 2147483647, %v137_v39  ;;  %v168_v53 = vor.u32 1.1754944e-38, %v167_v45 }
 0x128   :  { %vm143_vm8 = vweird.f32 %v137_v39  ;;  %vm166_vm9 = vcmp.eq.f32.partialorder %v165_v48, 8.507059e+37 }
 0x129   :  { %v150_v56 = vor.u32 1.1754944e-38, %v149_v49  ;;  %vm148_vm11 = vcmp.eq.f32.partialorder %v147_v51, 8.507059e+37 }
 0x12b   :  { %v208_v40 = vpop.eup %207 }
 0x12c   :  { %v157_v41 = vmul.f32 %v208_v40, %v155_v37  ;;  %vm162_vm3 = vweird.f32 %v208_v40 }
 0x12d   :  { %v210_v42 = vpop.eup %209  ;;  %vm163_vm6 = vmor %vm161_vm4, %vm162_vm3 }
 0x12e   :  { %v139_v43 = vmul.f32 %v210_v42, %v137_v39  ;;  %v158_v44 = vsub.f32 1.0, %v157_v41  ;;  %vm144_vm5 = vweird.f32 %v210_v42 }
 0x12f   :  { %vm145_vm10 = vmor %vm143_vm8, %vm144_vm5 }
 0x130   :  { %v140_v46 = vsub.f32 1.0, %v139_v43  ;;  %v159_v47 = vmul.f32 %v208_v40, %v158_v44 }
 0x132   :  { %v141_v50 = vmul.f32 %v210_v42, %v140_v46  ;;  %v160_v52 = vadd.f32 %v208_v40, %v159_v47 }
 0x134   :  { %v142_v54 = vadd.f32 %v210_v42, %v141_v50  ;;  %v164_v55 = vsel %vm163_vm6, %v208_v40, %v160_v52 }
 0x135   :  { %v169_v57 = vsel %vm166_vm9, %v168_v53, %v164_v55 }
 0x136   :  { %v146_v58 = vsel %vm145_vm10, %v210_v42, %v142_v54  ;;  %173 = vst.msk [vmem:[#allocation3 + $0x1] sm:$0x1] %vm171_vm7, %v169_v57 }
 0x137   :  { %v151_v59 = vsel %vm148_vm11, %v150_v56, %v146_v58 }
 0x138   :  { %172 = vst.msk [vmem:[#allocation3] sm:$0x1] %vm171_vm7, %v151_v59 }
 0x139   :  { %184 = dma.vmem_to_hbm [thread:$0]  %s180_s11, 32, %s182_s14, [#allocation4]  }
 0x13a   :  { %235 = dma.done.wait [#allocation4], 32  }
 0x13b   :  { %236 = vsyncadd [#allocation4], 4294967264 }
 0x13c   :  { %189 = vsyncpa [#allocation4], 1 }

</bundles_post_ra>
